<compile_context>
chip_gen: v7x
topology: tpu7x:2x2x1
jax: 0.10.0
libtpu: 0.0.40
codegen_flags: <defaults>
</compile_context>

<pallas_src>
import functools

import jax
import jax.numpy as jnp
from jax.experimental import pallas as pl
from jax.experimental.pallas import tpu as pltpu

LANE = 128  # TPU lane width


# ----------------------------------------------------------------------------
# Kernel
# ----------------------------------------------------------------------------
def _fused_mlp_kernel(x_ref, *refs, n_layers, out_pads):
    """Fused (Linear+ReLU)* -> Linear, all activations stay in VMEM/vregs.

    refs = (w_0, ..., w_{n-1}, bias_packed, o_ref)
      x_ref:       (Bt, Din)           f32   (cast to bf16 in-kernel)
      w_i:         (Din_pad_i, Dout_pad_i)  bf16, zero-padded, lane-dense
      bias_packed: (n_layers, max_out_pad)  f32, row i = layer-i bias (padded)
      o_ref:       (Bt, out_pads[-1])  f32, lane-dense unmasked store
    """
    o_ref = refs[-1]
    w_refs = refs[:n_layers]
    b_ref = refs[n_layers]

    act = x_ref[...].astype(jnp.bfloat16)  # in-kernel cast (free VALU slot)
    acc = None
    for i in range(n_layers):
        op = out_pads[i]
        acc = jnp.dot(act, w_refs[i][...], preferred_element_type=jnp.float32)
        acc = acc + b_ref[i:i + 1, :op]          # f32 epilogue (v5e-safe)
        if i < n_layers - 1:
            act = jnp.maximum(acc, 0.0).astype(jnp.bfloat16)
    o_ref[...] = acc.astype(o_ref.dtype)


# ----------------------------------------------------------------------------
# One-time parameter prep (hoisted OUT of the per-call path)
# ----------------------------------------------------------------------------
def prepare_mlp_params(params, lane=LANE):
    """Convert PyTorch-style [(W[in,out] f32, b[out] f32), ...] once.

    Returns (weights_bf16, bias_packed_f32, out_pads, out_true):
      * every layer's out dim zero-padded to a multiple of `lane` (min lane),
      * every layer's in dim padded to match the previous padded out dim,
      * weights cast to bf16,
      * all biases packed into one lane-dense f32 (n_layers, max_out_pad).
    Zero padding keeps the first `out_true` output columns numerically exact.
    """
    w_list, b_rows, out_pads = [], [], []
    prev_out_pad = None
    for idx, (w, b) in enumerate(params):
        din, dout = w.shape
        in_pad = din if idx == 0 else prev_out_pad
        out_pad = max(lane, ((dout + lane - 1) // lane) * lane)
        w_p = jnp.zeros((in_pad, out_pad), jnp.float32).at[:din, :dout].set(w)
        b_p = jnp.zeros((out_pad,), jnp.float32).at[:dout].set(b)
        w_list.append(w_p.astype(jnp.bfloat16))
        b_rows.append(b_p)
        out_pads.append(out_pad)
        prev_out_pad = out_pad
    max_pad = max(out_pads)
    bias_packed = jnp.stack(
        [jnp.pad(r, (0, max_pad - r.shape[0])) for r in b_rows]
    ).astype(jnp.float32)
    out_true = params[-1][0].shape[1]
    return tuple(w_list), bias_packed, tuple(out_pads), out_true


# ----------------------------------------------------------------------------
# Forward
# ----------------------------------------------------------------------------
def mlp_forward(x, weights, bias_packed, out_pads, *, out_dtype=jnp.float32,
                batch_tile=256):
    """Reproduces MLP.forward: flatten -> (Linear+ReLU)* -> Linear.

    Returns the lane-dense PADDED logits (B, out_pads[-1]); slice to the true
    class count (or fuse that slice into the downstream consumer).
    """
    B = x.shape[0]
    x2 = x.reshape(B, -1).astype(jnp.float32)  # flatten only; cast is in-kernel
    din = x2.shape[1]
    n_layers = len(weights)
    out_pad = out_pads[-1]

    kernel = functools.partial(_fused_mlp_kernel, n_layers=n_layers,
                               out_pads=out_pads)

    flops = sum(2 * B * w.shape[0] * w.shape[1] for w in weights)
    bytes_accessed = (x2.size * 4 + sum(w.size * 2 for w in weights)
                      + bias_packed.size * 4 + B * out_pad * 4)
    ce = pl.CostEstimate(flops=flops, transcendentals=0,
                         bytes_accessed=bytes_accessed)

    ins = (x2, *weights, bias_packed)

    if B >= 2 * batch_tile and B % batch_tile == 0:
        # Large batch: pipeline activation tiles over a parallel batch grid;
        # weights/bias use constant index maps so they stay VMEM-resident.
        in_specs = (
            [pl.BlockSpec((batch_tile, din), lambda i: (i, 0))]
            + [pl.BlockSpec(w.shape, lambda i: (0, 0)) for w in weights]
            + [pl.BlockSpec(bias_packed.shape, lambda i: (0, 0))]
        )
        out_specs = pl.BlockSpec((batch_tile, out_pad), lambda i: (i, 0))
        return pl.pallas_call(
            kernel,
            out_shape=jax.ShapeDtypeStruct((B, out_pad), out_dtype),
            grid=(B // batch_tile,),
            in_specs=in_specs,
            out_specs=out_specs,
            compiler_params=pltpu.CompilerParams(
                dimension_semantics=("parallel",)),
            cost_estimate=ce,
        )(*ins)

    # Small batch: single invocation, everything VMEM-resident, no grid
    # bookkeeping (total footprint < 1 MB).
    return pl.pallas_call(
        kernel,
        out_shape=jax.ShapeDtypeStruct((B, out_pad), out_dtype),
        in_specs=[pl.BlockSpec(memory_space=pltpu.MemorySpace.VMEM)] * len(ins),
        out_specs=pl.BlockSpec(memory_space=pltpu.MemorySpace.VMEM),
        cost_estimate=ce,
    )(*ins)


# ----------------------------------------------------------------------------
# Param init (mimics nn.Linear's U(-1/sqrt(in), 1/sqrt(in)))
# ----------------------------------------------------------------------------
def init_mlp_params(key, input_dim, hidden_dims, output_class):
    """Returns [(W[in, out] f32, b[out] f32), ...], hidden layers then output."""
    neurons = [input_dim] + list(hidden_dims) + [output_class]
    params = []
    for in_dim, out_dim in zip(neurons[:-1], neurons[1:]):
        key, kw, kb = jax.random.split(key, 3)
        bound = 1.0 / (in_dim ** 0.5)
        w = jax.random.uniform(kw, (in_dim, out_dim), jnp.float32, -bound, bound)
        b = jax.random.uniform(kb, (out_dim,), jnp.float32, -bound, bound)
        params.append((w, b))
    return params


if __name__ == "__main__":
    # Small MNIST-like MLP: 784 -> 128 -> 64 -> 10, batch of 8.
    input_dim = 784
    hidden_dims = [128, 64]
    output_class = 10
    batch = 8

    key = jax.random.PRNGKey(0)
    key_x, key_p = jax.random.split(key)
    x = jax.random.normal(key_x, (batch, input_dim), dtype=jnp.float32)
    params = init_mlp_params(key_p, input_dim, hidden_dims, output_class)

    # One-time prep (outside the per-call path).
    weights, bias_packed, out_pads, out_true = prepare_mlp_params(params)

    fwd = jax.jit(lambda xx: mlp_forward(xx, weights, bias_packed, out_pads))
    out_padded = jax.block_until_ready(fwd(x))
    logits = out_padded[:, :out_true]  # class slice done by the consumer

    # Reference with identical bf16-matmul / f32-accumulate math (plain JAX).
    ref = x.reshape(batch, -1).astype(jnp.bfloat16)
    for idx, (w, b) in enumerate(params):
        acc = jnp.dot(ref, w.astype(jnp.bfloat16),
                      preferred_element_type=jnp.float32) + b
        if idx != len(params) - 1:
            ref = jnp.maximum(acc, 0.0).astype(jnp.bfloat16)
        else:
            ref = acc

    assert out_padded.shape == (batch, out_pads[-1])
    assert logits.shape == (batch, output_class)
    assert jnp.allclose(logits, ref, atol=2e-2, rtol=2e-2), (
        float(jnp.max(jnp.abs(logits - ref)))
    )
    # Padded logit columns must be exactly zero (zero weights + zero bias).
    assert jnp.all(out_padded[:, out_true:] == 0.0)

    print("KERNEL_OK")
</pallas_src>

<mosaic_0001>
module attributes {stable_mosaic.version = 11 : i64} {
  func.func @_fused_mlp_kernel(%arg0: memref<8x784xf32, #tpu.memory_space<vmem>>, %arg1: memref<784x128xbf16, #tpu.memory_space<vmem>>, %arg2: memref<128x128xbf16, #tpu.memory_space<vmem>>, %arg3: memref<128x128xbf16, #tpu.memory_space<vmem>>, %arg4: memref<3x128xf32, #tpu.memory_space<vmem>>, %arg5: memref<8x128xf32, #tpu.memory_space<vmem>>) attributes {dimension_semantics = [], scalar_prefetch = 0 : i64, scratch_operands = 0 : i64, tpu.core_type = #tpu.core_type<tc>} {
    %c0 = arith.constant 0 : index
    %c0_0 = arith.constant 0 : index
    %0 = vector.load %arg0[%c0, %c0_0] : memref<8x784xf32, #tpu.memory_space<vmem>>, vector<8x784xf32>
    %1 = arith.truncf %0 : vector<8x784xf32> to vector<8x784xbf16>
    %c0_1 = arith.constant 0 : index
    %c0_2 = arith.constant 0 : index
    %2 = vector.load %arg1[%c0_1, %c0_2] : memref<784x128xbf16, #tpu.memory_space<vmem>>, vector<784x128xbf16>
    %cst = arith.constant dense<0.000000e+00> : vector<8x128xf32>
    %3 = tpu.matmul %1, %2, %cst {dimension_numbers = #tpu.dot_dimension_numbers<[1], [0], [0], [1], [0, 0, 1, 1], [], []>} : vector<8x784xbf16>, vector<784x128xbf16>, vector<8x128xf32> -> vector<8x128xf32>
    %c0_3 = arith.constant 0 : index
    %c0_4 = arith.constant 0 : index
    %4 = vector.load %arg4[%c0_3, %c0_4] : memref<3x128xf32, #tpu.memory_space<vmem>>, vector<1x128xf32>
    %5 = vector.broadcast %4 : vector<1x128xf32> to vector<8x128xf32>
    %6 = arith.addf %3, %5 : vector<8x128xf32>
    %cst_5 = arith.constant 0.000000e+00 : f32
    %7 = vector.broadcast %cst_5 : f32 to vector<8x128xf32>
    %8 = arith.maximumf %6, %7 : vector<8x128xf32>
    %9 = arith.truncf %8 : vector<8x128xf32> to vector<8x128xbf16>
    %c0_6 = arith.constant 0 : index
    %c0_7 = arith.constant 0 : index
    %10 = vector.load %arg2[%c0_6, %c0_7] : memref<128x128xbf16, #tpu.memory_space<vmem>>, vector<128x128xbf16>
    %cst_8 = arith.constant dense<0.000000e+00> : vector<8x128xf32>
    %11 = tpu.matmul %9, %10, %cst_8 {dimension_numbers = #tpu.dot_dimension_numbers<[1], [0], [0], [1], [0, 0, 1, 1], [], []>} : vector<8x128xbf16>, vector<128x128xbf16>, vector<8x128xf32> -> vector<8x128xf32>
    %c1 = arith.constant 1 : index
    %c0_9 = arith.constant 0 : index
    %12 = vector.load %arg4[%c1, %c0_9] : memref<3x128xf32, #tpu.memory_space<vmem>>, vector<1x128xf32>
    %13 = vector.broadcast %12 : vector<1x128xf32> to vector<8x128xf32>
    %14 = arith.addf %11, %13 : vector<8x128xf32>
    %cst_10 = arith.constant 0.000000e+00 : f32
    %15 = vector.broadcast %cst_10 : f32 to vector<8x128xf32>
    %16 = arith.maximumf %14, %15 : vector<8x128xf32>
    %17 = arith.truncf %16 : vector<8x128xf32> to vector<8x128xbf16>
    %c0_11 = arith.constant 0 : index
    %c0_12 = arith.constant 0 : index
    %18 = vector.load %arg3[%c0_11, %c0_12] : memref<128x128xbf16, #tpu.memory_space<vmem>>, vector<128x128xbf16>
    %cst_13 = arith.constant dense<0.000000e+00> : vector<8x128xf32>
    %19 = tpu.matmul %17, %18, %cst_13 {dimension_numbers = #tpu.dot_dimension_numbers<[1], [0], [0], [1], [0, 0, 1, 1], [], []>} : vector<8x128xbf16>, vector<128x128xbf16>, vector<8x128xf32> -> vector<8x128xf32>
    %c2 = arith.constant 2 : index
    %c0_14 = arith.constant 0 : index
    %20 = vector.load %arg4[%c2, %c0_14] : memref<3x128xf32, #tpu.memory_space<vmem>>, vector<1x128xf32>
    %21 = vector.broadcast %20 : vector<1x128xf32> to vector<8x128xf32>
    %22 = arith.addf %19, %21 : vector<8x128xf32>
    %c0_15 = arith.constant 0 : index
    %c0_16 = arith.constant 0 : index
    %23 = vector.load %arg5[%c0_15, %c0_16] : memref<8x128xf32, #tpu.memory_space<vmem>>, vector<8x128xf32>
    tpu.vector_store %arg5[%c0_15, %c0_16], %22 {strides = array<i32>} : memref<8x128xf32, #tpu.memory_space<vmem>>, vector<8x128xf32>,
    return
  }
}

</mosaic_0001>

<bundles_post_ra>
// kernel: _lambda_.1
= control target key start
LH: loop header
LB: loop body
LE: loop exit
PB: predicated region body
PF: predicated region fallthrough
CT: control target
= control target key end

     0   :  { %10 = vsyncpa [#allocation3], 0  ;;  %s1423_s0 = inlined_call_operand.hbm [shape: f32[8,784], index: 0, kind: input, shape index: {}]   ;;  %s1424_s1 = inlined_call_operand.hbm [shape: bf16[784,128], index: 1, kind: input, shape index: {}]   ;;  %s1425_s2 = inlined_call_operand.hbm [shape: bf16[128,128], index: 2, kind: input, shape index: {}]   ;;  %s1426_s3 = inlined_call_operand.hbm [shape: bf16[128,128], index: 3, kind: input, shape index: {}]   ;;  %s1427_s4 = inlined_call_operand.vmem [shape: f32[3,128], index: 4, kind: input, shape index: {}]   ;;  %s1428_s5 = inlined_call_operand.hbm [shape: f32[8,128], index: 5, kind: output, shape index: {}]  }
   0x1   :  { %11 = vsyncpa [#allocation6], 0 }
   0x2   :  { %12 = vsyncpa [#allocation9], 0 }
   0x3   :  { %13 = vsyncpa [#allocation4], 0  ;;  %s1283_s18 = smov [#allocation5]   ;;  %s1165_s22 = scalar_lea.hbm %s1424_s1, 6272 }
   0x4   :  { %s29_s19 = sshll.u32 %s1283_s18, 4  ;;  %p1166_p0 = scmp.ne.s32.totalorder %s1424_s1, %s1165_s22  ;;  %s30_s19 = int_to_ptr.vmem [resolvable:$true] %s29_s19 }
   0x5   :  { %p1169_p1 = scmp.lt.u32.totalorder %s1165_s22, %s1424_s1 }
   0x7   :  { %p1171_p2 = pnand %p1169_p1, %p1166_p0 }
   0x9   :  { %1174 = shalt.err (!%p1171_p2)
}
   0xa   :  { %s1175_s27 = scalar_lea.vmem %s30_s19, 6272  ;;  %p1180_p4 = scmp.lt.s32.totalorder %s30_s19, %s30_s19 }
   0xb   :  { %p1176_p3 = scmp.ne.s32.totalorder %s30_s19, %s1175_s27  ;;  %p1181_p5 = scmp.lt.s32.totalorder %s1175_s27, %s1175_s27 }
   0xd   :  { %p1182_p6 = por %p1181_p5, %p1180_p4 }
   0xf   :  { %p1183_p7 = pnand %p1182_p6, %p1176_p3 }
  0x11   :  { %1186 = shalt.err (!%p1183_p7)
}
  0x12   :  { %s1284_s28 = smov 64   ;;  %s1285_s29 = smov 4  }
  0x13   :  { %35 = dma.hbm_to_vmem [thread:$0]  %s1424_s1, 6272, %s30_s19, [#allocation6], %s1284_s28, %s1284_s28, %s1285_s29  }
  0x14   :  { %s1286_s7 = smov [#allocation2]   ;;  %s1287_s9 = smov [#allocation7]  }
  0x15   :  { %s20_s8 = sshll.u32 %s1286_s7, 4  ;;  %s41_s10 = sshll.u32 %s1287_s9, 4  ;;  %s21_s8 = int_to_ptr.vmem [resolvable:$true] %s20_s8  ;;  %s42_s10 = int_to_ptr.vmem [resolvable:$true] %s41_s10 }
  0x16   :  { %s1187_s13 = scalar_lea.hbm %s1423_s0, 896 }
  0x17   :  { %p1188_p8 = scmp.ne.s32.totalorder %s1423_s0, %s1187_s13  ;;  %p1191_p9 = scmp.lt.u32.totalorder %s1187_s13, %s1423_s0 }
  0x19   :  { %p1193_p10 = pnand %p1191_p9, %p1188_p8 }
  0x1b   :  { %1196 = shalt.err (!%p1193_p10)
}
  0x1c   :  { %s1197_s1 = scalar_lea.vmem %s21_s8, 896  ;;  %p1202_p12 = scmp.lt.s32.totalorder %s21_s8, %s21_s8 }
  0x1d   :  { %p1198_p11 = scmp.ne.s32.totalorder %s21_s8, %s1197_s1  ;;  %p1203_p13 = scmp.lt.s32.totalorder %s1197_s1, %s1197_s1 }
  0x1f   :  { %p1204_p0 = por %p1203_p13, %p1202_p12 }
  0x21   :  { %p1205_p1 = pnand %p1204_p0, %p1198_p11 }
  0x23   :  { %1208 = shalt.err (!%p1205_p1)
}
  0x24   :  { %23 = dma.hbm_to_vmem [thread:$0]  %s1423_s0, 896, %s21_s8, [#allocation3]  }
  0x25   :  { %s1209_s22 = scalar_lea.hbm %s1425_s2, 1024 }
  0x26   :  { %p1210_p2 = scmp.ne.s32.totalorder %s1425_s2, %s1209_s22  ;;  %p1213_p3 = scmp.lt.u32.totalorder %s1209_s22, %s1425_s2 }
  0x28   :  { %p1215_p4 = pnand %p1213_p3, %p1210_p2 }
  0x2a   :  { %1218 = shalt.err (!%p1215_p4)
}
  0x2b   :  { %s1219_s27 = scalar_lea.vmem %s42_s10, 1024  ;;  %p1224_p6 = scmp.lt.s32.totalorder %s42_s10, %s42_s10 }
  0x2c   :  { %p1220_p5 = scmp.ne.s32.totalorder %s42_s10, %s1219_s27  ;;  %p1225_p7 = scmp.lt.s32.totalorder %s1219_s27, %s1219_s27 }
  0x2e   :  { %p1226_p8 = por %p1225_p7, %p1224_p6 }
  0x30   :  { %p1227_p9 = pnand %p1226_p8, %p1220_p5 }
  0x32   :  { %1230 = shalt.err (!%p1227_p9)
}
  0x33   :  { %47 = dma.hbm_to_vmem [thread:$0]  %s1425_s2, 1024, %s42_s10, [#allocation6], %s1284_s28, %s1284_s28, %s1285_s29  }
  0x34   :  { %s1288_s6 = smov [#allocation8]   ;;  %s1231_s11 = scalar_lea.hbm %s1426_s3, 1024 }
  0x35   :  { %s53_s7 = sshll.u32 %s1288_s6, 4  ;;  %p1232_p10 = scmp.ne.s32.totalorder %s1426_s3, %s1231_s11  ;;  %s54_s7 = int_to_ptr.vmem [resolvable:$true] %s53_s7 }
  0x36   :  { %p1235_p11 = scmp.lt.u32.totalorder %s1231_s11, %s1426_s3 }
  0x38   :  { %p1237_p12 = pnand %p1235_p11, %p1232_p10 }
  0x3a   :  { %1240 = shalt.err (!%p1237_p12)
}
  0x3b   :  { %s1241_s16 = scalar_lea.vmem %s54_s7, 1024  ;;  %p1246_p0 = scmp.lt.s32.totalorder %s54_s7, %s54_s7 }
  0x3c   :  { %p1242_p13 = scmp.ne.s32.totalorder %s54_s7, %s1241_s16  ;;  %p1247_p1 = scmp.lt.s32.totalorder %s1241_s16, %s1241_s16 }
  0x3e   :  { %p1248_p2 = por %p1247_p1, %p1246_p0 }
  0x40   :  { %p1249_p3 = pnand %p1248_p2, %p1242_p13 }
  0x42   :  { %1252 = shalt.err (!%p1249_p3)
}
  0x43   :  { %59 = dma.hbm_to_vmem [thread:$0]  %s1426_s3, 1024, %s54_s7, [#allocation9], %s1284_s28, %s1284_s28, %s1285_s29  }
  0x44   :  { %1275 = dma.done.wait [#allocation3], 896  }
  0x45   :  { %1276 = vsyncadd [#allocation3], 4294966400 }
  0x46   :  { %1277 = dma.done.wait [#allocation6], 7296  }
  0x47   :  { %1278 = vsyncadd [#allocation6], 4294960000 }
  0x48   :  { %1279 = dma.done.wait [#allocation9], 1024  }
  0x49   :  { %1280 = vsyncadd [#allocation9], 4294966272  ;;  %v1100_v0 = vld [vmem:[#allocation5 + $0x40] sm:$0xff]   ;;  %v1104_v4 = vld [vmem:[#allocation5 + $0x48] sm:$0xff]   ;;  %v1289_v44 = vmov 0.0   ;;  %vm1290_vm0 = vmmov 0  }
  0x4a   :  { %v1101_v1 = vld [vmem:[#allocation5] sm:$0xff]   ;;  %959 = vmatprep.subr.bf16.mxu0 %v1100_v0  ;;  %v1105_v5 = vld [vmem:[#allocation5 + $0x8] sm:$0xff]   ;;  %v1108_v8 = vld [vmem:[#allocation5 + $0x50] sm:$0xff]   ;;  %vm486_vm1 = vcmask 130048   ;;  %s1291_s19 = smov [#allocation10]  }
  0x4b   :  { %v1102_v2 = vld [vmem:[#allocation5 + $0xc0] sm:$0xff]   ;;  %960 = vmatpush3.bf16.msra.mxu0 %v1101_v1  ;;  %v1106_v6 = vld [vmem:[#allocation5 + $0xc8] sm:$0xff]   ;;  %v1109_v9 = vld [vmem:[#allocation5 + $0x10] sm:$0xff]   ;;  %s879_s20 = sshll.u32 %s1291_s19, 4  ;;  %s880_s20 = int_to_ptr.vmem [resolvable:$true] %s879_s20 }
  0x4c   :  { %v1103_v3 = vld [vmem:[#allocation5 + $0x80] sm:$0xff]   ;;  %981 = vmatprep.subr.bf16.mxu1 %v1102_v2  ;;  %961 = vmatprep.subr.bf16.mxu0 %v1104_v4  ;;  %v1107_v7 = vld [vmem:[#allocation5 + $0x88] sm:$0xff]   ;;  %v1110_v10 = vld [vmem:[#allocation5 + $0xd0] sm:$0xff]   ;;  %s1253_s21 = scalar_lea.vmem %s880_s20, 128  ;;  %p1258_p5 = scmp.lt.s32.totalorder %s880_s20, %s880_s20 }
  0x4d   :  { %982 = vmatpush3.bf16.msra.mxu1 %v1103_v3  ;;  %v1111_v11 = vld [vmem:[#allocation5 + $0x90] sm:$0xff]   ;;  %v1112_v12 = vld [vmem:[#allocation5 + $0x58] sm:$0xff]   ;;  %v1116_v16 = vld [vmem:[#allocation5 + $0x60] sm:$0xff]   ;;  %p1254_p4 = scmp.ne.s32.totalorder %s880_s20, %s1253_s21  ;;  %p1259_p6 = scmp.lt.s32.totalorder %s1253_s21, %s1253_s21 }
  0x4e   :  { %983 = vmatprep.subr.bf16.mxu1 %v1106_v6  ;;  %v1113_v13 = vld [vmem:[#allocation5 + $0x18] sm:$0xff]   ;;  %v1117_v17 = vld [vmem:[#allocation5 + $0x20] sm:$0xff]   ;;  %v1120_v20 = vld [vmem:[#allocation5 + $0x68] sm:$0xff]  }
  0x4f   :  { %962 = vmatpush3.bf16.msra.mxu0 %v1105_v5  ;;  %v1114_v14 = vld [vmem:[#allocation5 + $0xd8] sm:$0xff]   ;;  %v1118_v18 = vld [vmem:[#allocation5 + $0xe0] sm:$0xff]   ;;  %v1121_v21 = vld [vmem:[#allocation5 + $0x28] sm:$0xff]   ;;  %p1260_p7 = por %p1259_p6, %p1258_p5 }
  0x50   :  { %963 = vmatprep.subr.bf16.mxu0 %v1108_v8  ;;  %v1115_v15 = vld [vmem:[#allocation5 + $0x98] sm:$0xff]   ;;  %v1119_v19 = vld [vmem:[#allocation5 + $0xa0] sm:$0xff]   ;;  %v1122_v22 = vld [vmem:[#allocation5 + $0xe8] sm:$0xff]  }
  0x51   :  { %984 = vmatpush3.bf16.msra.mxu1 %v1107_v7  ;;  %v1123_v23 = vld [vmem:[#allocation5 + $0xa8] sm:$0xff]   ;;  %v1124_v24 = vld [vmem:[#allocation5 + $0x70] sm:$0xff]   ;;  %v1128_v28 = vld [vmem:[#allocation5 + $0x78] sm:$0xff]   ;;  %p1261_p8 = pnand %p1260_p7, %p1254_p4 }
  0x52   :  { %985 = vmatprep.subr.bf16.mxu1 %v1110_v10  ;;  %v1125_v25 = vld [vmem:[#allocation5 + $0x30] sm:$0xff]   ;;  %v1129_v29 = vld [vmem:[#allocation5 + $0x38] sm:$0xff]   ;;  %v75_v34 = vld [vmem:[#allocation2] sm:$0xff] }
  0x53   :  { %964 = vmatpush3.bf16.msra.mxu0 %v1109_v9  ;;  %v1126_v26 = vld [vmem:[#allocation5 + $0xf0] sm:$0xff]   ;;  %v1130_v30 = vld [vmem:[#allocation5 + $0xf8] sm:$0xff]   ;;  %v82_v35 = vpack.c.bf16 %v75_v34, %v75_v34  ;;  %v1132_v36 = vld [vmem:[#allocation5 + $0x140] sm:$0xff]  }
  0x54   :  { %965 = vmatprep.subr.bf16.mxu0 %v1112_v12  ;;  %v1127_v27 = vld [vmem:[#allocation5 + $0xb0] sm:$0xff]   ;;  %v1131_v33 = vld [vmem:[#allocation5 + $0xb8] sm:$0xff]   ;;  %v78_v37 = vld [vmem:[#allocation2 + $0x18] sm:$0xff] }
  0x55   :  { %986 = vmatpush3.bf16.msra.mxu1 %v1111_v11  ;;  %v76_v31 = vld [vmem:[#allocation2 + $0x8] sm:$0xff]  ;;  %v85_v38 = vpack.c.bf16 %v78_v37, %v78_v37  ;;  %v1133_v39 = vld [vmem:[#allocation5 + $0x100] sm:$0xff]   ;;  %v77_v40 = vld [vmem:[#allocation2 + $0x10] sm:$0xff] }
  0x56   :  { %987 = vmatprep.subr.bf16.mxu1 %v1114_v14  ;;  %v83_v32 = vpack.c.bf16 %v76_v31, %v76_v31  ;;  %v84_v41 = vpack.c.bf16 %v77_v40, %v77_v40  ;;  %v1134_v42 = vld [vmem:[#allocation5 + $0x148] sm:$0xff]   ;;  %v1136_v45 = vld [vmem:[#allocation5 + $0x150] sm:$0xff]   ;;  %v1138_v47 = vld [vmem:[#allocation5 + $0x158] sm:$0xff]  }
  0x57   :  { %966 = vmatpush3.bf16.msra.mxu0 %v1113_v13  ;;  %562 = vmatprep.mubr.bf16.mxu1 %v85_v38  ;;  %v1135_v43 = vld [vmem:[#allocation5 + $0x108] sm:$0xff]   ;;  %v1137_v46 = vld [vmem:[#allocation5 + $0x110] sm:$0xff]   ;;  %v1139_v48 = vld [vmem:[#allocation5 + $0x118] sm:$0xff]  }
  0x58   :  { %967 = vmatprep.subr.bf16.mxu0 %v1116_v16  ;;  %522 = vmatprep.mubr.bf16.mxu0 %v83_v32  ;;  %v1140_v49 = vld [vmem:[#allocation5 + $0x160] sm:$0xff]   ;;  %v1142_v51 = vld [vmem:[#allocation5 + $0x168] sm:$0xff]   ;;  %v80_v54 = vld [vmem:[#allocation2 + $0x28] sm:$0xff] }
  0x59   :  { %988 = vmatpush3.bf16.msra.mxu1 %v1115_v15  ;;  %v1141_v50 = vld [vmem:[#allocation5 + $0x120] sm:$0xff]   ;;  %v1143_v52 = vld [vmem:[#allocation5 + $0x128] sm:$0xff]   ;;  %v1144_v55 = vld [vmem:[#allocation5 + $0x170] sm:$0xff]   ;;  %v87_v56 = vpack.c.bf16 %v80_v54, %v80_v54 }
  0x5a   :  { %989 = vmatprep.subr.bf16.mxu1 %v1118_v18  ;;  %v1148_v53 = vld [vmem:[#allocation5 + $0x180] sm:$0xff]   ;;  %v81_v57 = vld [vmem:[#allocation2 + $0x30] sm:$0xff]  ;;  %v1145_v59 = vld [vmem:[#allocation5 + $0x130] sm:$0xff]  }
  0x5b   :  { %968 = vmatpush3.bf16.msra.mxu0 %v1117_v17  ;;  %v88_v58 = vpack.c.bf16 %v81_v57, %v81_v57  ;;  %v1146_v60 = vld [vmem:[#allocation5 + $0x178] sm:$0xff]   ;;  %v79_v62 = vld [vmem:[#allocation2 + $0x20] sm:$0xff]  ;;  %v1150_v1 = vld [vmem:[#allocation7 + $0x8] sm:$0xff]  }
  0x5c   :  { %969 = vmatprep.subr.bf16.mxu0 %v1120_v20  ;;  %v1147_v61 = vld [vmem:[#allocation5 + $0x138] sm:$0xff]   ;;  %v86_v63 = vpack.c.bf16 %v79_v62, %v79_v62  ;;  %v1149_v0 = vld [vmem:[#allocation7] sm:$0xff]   ;;  %v1152_v3 = vld [vmem:[#allocation7 + $0x18] sm:$0xff]  }
  0x5d   :  { %990 = vmatpush3.bf16.msra.mxu1 %v1119_v19  ;;  %v1151_v2 = vld [vmem:[#allocation7 + $0x10] sm:$0xff]   ;;  %v1153_v4 = vld [vmem:[#allocation7 + $0x20] sm:$0xff]   ;;  %v1154_v5 = vld [vmem:[#allocation7 + $0x28] sm:$0xff]  }
  0x5e   :  { %991 = vmatprep.subr.bf16.mxu1 %v1122_v22  ;;  %v1155_v6 = vld [vmem:[#allocation7 + $0x30] sm:$0xff]   ;;  %v1156_v7 = vld [vmem:[#allocation7 + $0x38] sm:$0xff]   ;;  %v1157_v8 = vld [vmem:[#allocation8] sm:$0xff]  }
  0x5f   :  { %970 = vmatpush3.bf16.msra.mxu0 %v1121_v21  ;;  %v1158_v9 = vld [vmem:[#allocation8 + $0x8] sm:$0xff]   ;;  %v1159_v10 = vld [vmem:[#allocation8 + $0x10] sm:$0xff]   ;;  %v1160_v11 = vld [vmem:[#allocation8 + $0x18] sm:$0xff]  }
  0x60   :  { %971 = vmatprep.subr.bf16.mxu0 %v1124_v24  ;;  %v1161_v12 = vld [vmem:[#allocation8 + $0x20] sm:$0xff]   ;;  %v1162_v13 = vld [vmem:[#allocation8 + $0x28] sm:$0xff]   ;;  %v1163_v40 = vld [vmem:[#allocation8 + $0x30] sm:$0xff]  }
  0x61   :  { %992 = vmatpush3.bf16.msra.mxu1 %v1123_v23  ;;  %v890_v15 = vld [vmem:[%s1427_s4] ss:$0 sm:$0xff] }
  0x62   :  { %993 = vmatprep.subr.bf16.mxu1 %v1126_v26 }
  0x63   :  { %972 = vmatpush3.bf16.msra.mxu0 %v1125_v25 }
  0x64   :  { %973 = vmatprep.subr.bf16.mxu0 %v1128_v28 }
  0x65   :  { %994 = vmatpush3.bf16.msra.mxu1 %v1127_v27 }
  0x66   :  { %995 = vmatprep.subr.bf16.mxu1 %v1130_v30 }
  0x67   :  { %974 = vmatpush3.bf16.msra.mxu0 %v1129_v29 }
  0x68   :  { %1003 = vmatprep.subr.bf16.mxu0 %v1132_v36 }
  0x69   :  { %996 = vmatpush3.bf16.msra.mxu1 %v1131_v33 }
  0x6a   :  { %523 = vmatmul.mubr.bf16.vlgmr.msra.gmra.mrb[0].mxu0 %v82_v35  ;;  %1045 = vmatprep.subr.bf16.mxu1 %v1289_v44 }
  0x6b   :  { %1004 = vmatpush3.bf16.msra.mxu0 %v1133_v39  ;;  %602 = vmatprep.mubr.bf16.mxu0 %v87_v56 }
  0x6c   :  { %563 = vmatmul.mubr.bf16.vlgmr.msra.gmra.mrb[0].mxu1 %v84_v41  ;;  %1005 = vmatprep.subr.bf16.mxu0 %v1134_v42  ;;  %v1164_v41 = vld [vmem:[#allocation8 + $0x38] sm:$0xff]   ;;  %v941_v42 = vld [vmem:[%s1427_s4 + $0x1] ss:$0 sm:$0xff] }
  0x6d   :  { %1047 = vmatprep.mubr.msk.bf16.mxu1 %vm1290_vm0, %v1289_v44  ;;  %1046 = vmatpush3.bf16.msra.mxu1 %v1148_v53 }
  0x6e   :  { %1051 = vmatprep.subr.bf16.mxu1 %v1289_v44 }
  0x6f   :  { %1006 = vmatpush3.bf16.msra.mxu0 %v1135_v43 }
  0x70   :  { %1007 = vmatprep.subr.bf16.mxu0 %v1136_v45 }
  0x73   :  { %1008 = vmatpush3.bf16.msra.mxu0 %v1137_v46 }
  0x74   :  { %1009 = vmatprep.subr.bf16.mxu0 %v1138_v47  ;;  %1048 = vmatmul.mubr.msk.bf16.vlgmr.msra.gmra.mrb[4].mxu1 %vm486_vm1, %v88_v58 }
  0x75   :  { %1067 = vmatprep.mubr.msk.bf16.mxu1 %vm1290_vm0, %v1289_v44  ;;  %1052 = vmatpush3.bf16.msra.mxu1 %v1149_v0 }
  0x76   :  { %1053 = vmatprep.subr.bf16.mxu1 %v1289_v44 }
  0x77   :  { %1010 = vmatpush3.bf16.msra.mxu0 %v1139_v48 }
  0x78   :  { %1011 = vmatprep.subr.bf16.mxu0 %v1140_v49 }
  0x79   :  { %1054 = vmatpush3.bf16.msra.mxu1 %v1150_v1 }
  0x7a   :  { %1055 = vmatprep.subr.bf16.mxu1 %v1289_v44 }
  0x7b   :  { %1012 = vmatpush3.bf16.msra.mxu0 %v1141_v50 }
  0x7c   :  { %1013 = vmatprep.subr.bf16.mxu0 %v1142_v51  ;;  %v950_v51 = vld [vmem:[%s1427_s4 + $0x2] ss:$0 sm:$0xff] }
  0x7d   :  { %1056 = vmatpush3.bf16.msra.mxu1 %v1151_v2 }
  0x7e   :  { %1057 = vmatprep.subr.bf16.mxu1 %v1289_v44 }
  0x7f   :  { %1014 = vmatpush3.bf16.msra.mxu0 %v1143_v52 }
  0x80   :  { %1015 = vmatprep.subr.bf16.mxu0 %v1144_v55 }
  0x81   :  { %1058 = vmatpush3.bf16.msra.mxu1 %v1152_v3 }
  0x82   :  { %1059 = vmatprep.subr.bf16.mxu1 %v1289_v44 }
  0x83   :  { %1016 = vmatpush3.bf16.msra.mxu0 %v1145_v59 }
  0x84   :  { %1017 = vmatprep.subr.bf16.mxu0 %v1146_v60 }
  0x85   :  { %1060 = vmatpush3.bf16.msra.mxu1 %v1153_v4 }
  0x86   :  { %1061 = vmatprep.subr.bf16.mxu1 %v1289_v44 }
  0x87   :  { %1018 = vmatpush3.bf16.msra.mxu0 %v1147_v61 }
  0x88   :  { %1071 = vmatprep.subr.bf16.mxu0 %v1289_v44 }
  0x89   :  { %1062 = vmatpush3.bf16.msra.mxu1 %v1154_v5 }
  0x8a   :  { %603 = vmatmul.mubr.bf16.vlgmr.msra.gmra.mrb[4].mxu0 %v86_v63  ;;  %1063 = vmatprep.subr.bf16.mxu1 %v1289_v44 }
  0x8b   :  { %1087 = vmatprep.mubr.msk.bf16.mxu0 %vm1290_vm0, %v1289_v44  ;;  %1072 = vmatpush3.bf16.msra.mxu0 %v1157_v8 }
  0x8c   :  { %1073 = vmatprep.subr.bf16.mxu0 %v1289_v44 }
  0x8d   :  { %1064 = vmatpush3.bf16.msra.mxu1 %v1155_v6 }
  0x8e   :  { %1065 = vmatprep.subr.bf16.mxu1 %v1289_v44 }
  0x8f   :  { %1074 = vmatpush3.bf16.msra.mxu0 %v1158_v9 }
  0x90   :  { %1075 = vmatprep.subr.bf16.mxu0 %v1289_v44 }
  0x91   :  { %1066 = vmatpush3.bf16.msra.mxu1 %v1156_v7 }
  0x93   :  { %1076 = vmatpush3.bf16.msra.mxu0 %v1159_v10 }
  0x94   :  { %1077 = vmatprep.subr.bf16.mxu0 %v1289_v44 }
  0x97   :  { %1078 = vmatpush3.bf16.msra.mxu0 %v1160_v11 }
  0x98   :  { %1079 = vmatprep.subr.bf16.mxu0 %v1289_v44 }
  0x9b   :  { %1080 = vmatpush3.bf16.msra.mxu0 %v1161_v12 }
  0x9c   :  { %1081 = vmatprep.subr.bf16.mxu0 %v1289_v44 }
  0x9f   :  { %1082 = vmatpush3.bf16.msra.mxu0 %v1162_v13 }
  0xa0   :  { %1083 = vmatprep.subr.bf16.mxu0 %v1289_v44 }
  0xa3   :  { %1084 = vmatpush3.bf16.msra.mxu0 %v1163_v40 }
  0xa4   :  { %1085 = vmatprep.subr.bf16.mxu0 %v1289_v44 }
  0xa7   :  { %1086 = vmatpush3.bf16.msra.mxu0 %v1164_v41 }
 0x13d   :  { %v975_v14 = vpop.f32.mrb[0].mxu0 }
 0x13e   :  { %v976_v16 = vpop.f32.mrb[1].mxu0 }
 0x13f   :  { %v977_v17 = vadd.f32 %v976_v16, %v975_v14  ;;  %v978_v18 = vpop.f32.mrb[2].mxu0  ;;  %v997_v19 = vpop.f32.mrb[0].mxu1 }
 0x140   :  { %v979_v20 = vpop.f32.mrb[3].mxu0  ;;  %v998_v22 = vpop.f32.mrb[1].mxu1 }
 0x141   :  { %v525_v21 = vadd.f32 %v977_v17, %v890_v15  ;;  %v999_v23 = vadd.f32 %v998_v22, %v997_v19  ;;  %v1000_v24 = vpop.f32.mrb[2].mxu1 }
 0x142   :  { %v1001_v25 = vpop.f32.mrb[3].mxu1 }
 0x143   :  { %v565_v26 = vadd.f32 %v999_v23, %v525_v21 }
 0x147   :  { %v644_v27 = vpop.f32.mrb[4].mxu1 }
 0x148   :  { %v1049_v28 = vpop.f32.mrb[5].mxu1 }
 0x149   :  { %v647_v29 = vpop.f32.mrb[6].mxu1 }
 0x14a   :  { %v1050_v30 = vpop.f32.mrb[7].mxu1 }
 0x15d   :  { %v1019_v31 = vpop.f32.mrb[4].mxu0 }
 0x15e   :  { %v1020_v32 = vpop.f32.mrb[5].mxu0 }
 0x15f   :  { %v1021_v33 = vadd.f32 %v1020_v32, %v1019_v31  ;;  %v1022_v34 = vpop.f32.mrb[6].mxu0 }
 0x160   :  { %v1023_v35 = vpop.f32.mrb[7].mxu0 }
 0x161   :  { %v605_v36 = vadd.f32 %v1021_v33, %v565_v26 }
 0x163   :  { %v645_v37 = vadd.f32 %v644_v27, %v605_v36 }
 0x165   :  { %v650_v38 = vmax.f32 %v645_v37, 0.0 }
 0x167   :  { %v651_v39 = vpack.c.bf16 %v650_v38, %v650_v38 }
 0x169   :  { %1068 = vmatmul.mubr.bf16.vlgmr.msra.gmra.mrb[8].mxu1 %v651_v39 }
 0x23c   :  { %v755_v43 = vpop.f32.mrb[8].mxu1 }
 0x23d   :  { %v756_v45 = vadd.f32 %v941_v42, %v755_v43  ;;  %v1069_v46 = vpop.f32.mrb[9].mxu1 }
 0x23e   :  { %v758_v47 = vpop.f32.mrb[10].mxu1 }
 0x23f   :  { %v761_v48 = vmax.f32 %v756_v45, 0.0  ;;  %v1070_v49 = vpop.f32.mrb[11].mxu1 }
 0x241   :  { %v762_v50 = vpack.c.bf16 %v761_v48, %v761_v48 }
 0x243   :  { %1088 = vmatmul.mubr.bf16.vlgmr.msra.gmra.mrb[8].mxu0 %v762_v50 }
 0x316   :  { %v866_v44 = vpop.f32.mrb[8].mxu0 }
 0x317   :  { %v867_v52 = vadd.f32 %v950_v51, %v866_v44  ;;  %v1089_v53 = vpop.f32.mrb[9].mxu0 }
 0x318   :  { %v869_v54 = vpop.f32.mrb[10].mxu0 }
 0x319   :  { %872 = vst [vmem:[#allocation10] sm:$0xff] %v867_v52  ;;  %v1090_v55 = vpop.f32.mrb[11].mxu0 }
 0x31a   :  { %1264 = shalt.err (!%p1261_p8)
}
 0x31b   :  { %s1265_s4 = scalar_lea.hbm %s1428_s5, 128 }
 0x31c   :  { %p1266_p9 = scmp.ne.s32.totalorder %s1428_s5, %s1265_s4  ;;  %p1269_p10 = scmp.lt.u32.totalorder %s1265_s4, %s1428_s5 }
 0x31e   :  { %p1271_p11 = pnand %p1269_p10, %p1266_p9 }
 0x320   :  { %1274 = shalt.err (!%p1271_p11)
}
 0x321   :  { %882 = dma.vmem_to_hbm [thread:$0]  %s880_s20, 128, %s1428_s5, [#allocation4]  }
 0x322   :  { %1281 = dma.done.wait [#allocation4], 128  }
 0x323   :  { %1282 = vsyncadd [#allocation4], 4294967168 }
 0x324   :  { %886 = vsyncpa [#allocation3], 1 }
 0x325   :  { %887 = vsyncpa [#allocation6], 1 }
 0x326   :  { %888 = vsyncpa [#allocation9], 1 }
 0x327   :  { %889 = vsyncpa [#allocation4], 1 }

</bundles_post_ra>
